<compile_context>
chip_gen: v7x
topology: tpu7x:2x2x1
jax: 0.10.0
libtpu: 0.0.40
codegen_flags: <defaults>
</compile_context>

<pallas_src>
import math

import jax
import jax.numpy as jnp
from jax.experimental import pallas as pl
from jax.experimental.pallas import tpu as pltpu


def _round_up(x, m):
    return ((x + m - 1) // m) * m


# ---------------------------------------------------------------------------
# Kernel: one fused MLP tile.
# ---------------------------------------------------------------------------
def actor_mlp_kernel(x_ref, w1_ref, b1_ref, w2_ref, b2_ref, w3_ref, b3_ref, o_ref):
    # MXU operands in the weights' dtype (f32 or bf16); f32 accumulation;
    # all element-wise math (bias add / ReLU / tanh) in f32.
    cdt = w1_ref.dtype
    x = x_ref[...].astype(cdt)  # no-op when dtypes already match

    h1 = jnp.dot(x, w1_ref[...], preferred_element_type=jnp.float32) + b1_ref[...]
    h1 = jnp.maximum(h1, 0.0)  # ReLU (VPU)

    h2 = jnp.dot(h1.astype(cdt), w2_ref[...], preferred_element_type=jnp.float32) + b2_ref[...]
    h2 = jnp.maximum(h2, 0.0)  # ReLU (VPU)

    y = jnp.dot(h2.astype(cdt), w3_ref[...], preferred_element_type=jnp.float32) + b3_ref[...]
    o_ref[...] = jnp.tanh(y).astype(o_ref.dtype)  # tanh on the EUP


# ---------------------------------------------------------------------------
# One-time parameter preparation (cache the result; do NOT call per step).
# ---------------------------------------------------------------------------
def _choose_pack(embedding_dim, max_pack=8):
    """Smallest power-of-2 p (<= max_pack) making p*embedding_dim a multiple of 128."""
    p = 1
    while p <= max_pack:
        if (p * embedding_dim) % 128 == 0:
            return p
        p *= 2
    return 1


def prepare_actor_params(params, *, compute_dtype=None, max_pack=8):
    """Pack/expand ActorNetwork weights for the fused kernel, ONCE.

    Lane packing folds `pack` consecutive batch rows into one row of
    pack*features and expands weights to the equivalent block-diagonal form
    kron(I_pack, W) so every last dim is a multiple of 128 (full unmasked
    output vsts).  This is only "free" when each unpacked dim fits one 128-wide
    MXU tile, so it is gated on max(3k, h, k) <= 128; larger networks run
    unpacked to avoid pack^2 weight inflation and extra MXU passes.
    """
    w1, b1, w2, b2, w3, b3 = params
    in_dim, hidden = w1.shape
    emb = w3.shape[1]
    cdt = jnp.dtype(compute_dtype) if compute_dtype is not None else jnp.dtype(w1.dtype)

    pack = _choose_pack(emb, max_pack) if max(in_dim, hidden, emb) <= 128 else 1

    if pack > 1:
        eye = jnp.eye(pack, dtype=cdt)
        w1p = jnp.kron(eye, w1.astype(cdt))
        w2p = jnp.kron(eye, w2.astype(cdt))
        w3p = jnp.kron(eye, w3.astype(cdt))
        # Biases tile along the packed lane axis; element-wise path stays f32.
        b1p = jnp.tile(b1.astype(jnp.float32), (1, pack))
        b2p = jnp.tile(b2.astype(jnp.float32), (1, pack))
        b3p = jnp.tile(b3.astype(jnp.float32), (1, pack))
    else:
        w1p, w2p, w3p = (w.astype(cdt) for w in (w1, w2, w3))
        b1p, b2p, b3p = (b.astype(jnp.float32) for b in (b1, b2, b3))

    weight_bytes = sum(int(w.size) * w.dtype.itemsize for w in (w1p, w2p, w3p))
    bias_bytes = sum(int(b.size) * b.dtype.itemsize for b in (b1p, b2p, b3p))
    return dict(
        tensors=(w1p, b1p, w2p, b2p, w3p, b3p),
        pack=pack, in_dim=in_dim, hidden=hidden, emb=emb,
        compute_dtype=cdt, weight_bytes=weight_bytes, bias_bytes=bias_bytes,
    )


# ---------------------------------------------------------------------------
# Tiling heuristics.
# ---------------------------------------------------------------------------
_VMEM_BUDGET = 24 * 1024 * 1024   # streamed tiles + weights + f32 intermediates
_VMEM_LIMIT = 32 * 1024 * 1024    # >= scoped defaults everywhere, < v7x 64 MiB phys


def _choose_batch_tile(batch, unit, row_bytes, fixed_bytes, *,
                       target_rows=8192, min_steps=4, budget=_VMEM_BUDGET):
    """Batch tile (original rows): multiple of `unit`, ~target_rows (amortizes
    the ~0.35 us per-grid-step overhead on this HBM-bound kernel), >= min_steps
    grid steps when the batch allows (2 steps per v7x TensorCore keeps
    intra-core DMA/compute overlap), capped by a full VMEM accounting."""
    bt = _round_up(min(target_rows, max(batch, 1)), unit)
    if batch >= min_steps * unit:
        bt = min(bt, _round_up(pl.cdiv(batch, min_steps), unit))
    while bt > unit and fixed_bytes + bt * row_bytes > budget:
        bt = _round_up(bt // 2, unit)
    return bt


# ---------------------------------------------------------------------------
# Forward wrapper.
# ---------------------------------------------------------------------------
def actor_forward(x, prepared, *, batch_tile=None, interpret=False):
    """ActorNetwork forward: x (B, 3*embedding_dim) -> (B, embedding_dim).

    `prepared` comes from prepare_actor_params (cache it across calls).
    If the prepared compute dtype is narrower than x's dtype, x is downcast
    before streaming (halved HBM traffic; deviates from PyTorch f32 numerics
    only when the caller opted into bf16).  Output dtype follows x.
    """
    w1p, b1p, w2p, b2p, w3p, b3p = prepared["tensors"]
    pack = prepared["pack"]
    in_dim, hidden, emb = prepared["in_dim"], prepared["hidden"], prepared["emb"]
    cdt = prepared["compute_dtype"]

    B, xf = x.shape
    assert xf == in_dim, "x feature dim must match W1 fan-in"
    out_dtype = x.dtype

    # Stream x in the (possibly narrower) compute dtype: the kernel is
    # HBM-streaming bound, so fewer streamed bytes ~ wall clock.
    if jnp.dtype(cdt).itemsize < jnp.dtype(x.dtype).itemsize:
        x = x.astype(cdt)
    x_isz = jnp.dtype(x.dtype).itemsize
    o_isz = jnp.dtype(out_dtype).itemsize
    sublane = 8 if x_isz >= 4 else 32 // x_isz
    unit = sublane * pack

    # Full per-step VMEM accounting (review item): double-buffered x/out
    # streams, two f32 intermediates (h1, h2) per row, weights budgeted at 2x
    # (default pipeline double-buffers them even though the constant block
    # index elides the re-fetch), plus biases.
    row_bytes = 2 * (in_dim * x_isz + emb * o_isz) + 2 * hidden * 4
    fixed_bytes = 2 * prepared["weight_bytes"] + prepared["bias_bytes"]
    if batch_tile is None:
        batch_tile = _choose_batch_tile(B, unit, row_bytes, fixed_bytes)
    else:
        batch_tile = _round_up(batch_tile, unit)

    # Pad the batch to a tile multiple (handles non-divisible deployment batches).
    B_pad = _round_up(max(B, 1), batch_tile)
    grid = (B_pad // batch_tile,)
    if B_pad != B:
        x = jnp.pad(x, ((0, B_pad - B), (0, 0)))

    # Free row-major reshape folding `pack` rows into the lane axis.
    xp = x.reshape(B_pad // pack, pack * in_dim)
    rows = batch_tile // pack  # packed rows per grid step (multiple of sublane)

    def const_spec(shape):
        # Constant block index => the BlockSpec pipeline DMAs this block once.
        return pl.BlockSpec(shape, lambda i: (0,) * len(shape))

    out = pl.pallas_call(
        actor_mlp_kernel,
        out_shape=jax.ShapeDtypeStruct((B_pad // pack, pack * emb), out_dtype),
        grid_spec=pltpu.PrefetchScalarGridSpec(
            num_scalar_prefetch=0,
            grid=grid,
            in_specs=[
                pl.BlockSpec((rows, pack * in_dim), lambda i: (i, 0)),  # x tile
                const_spec(w1p.shape), const_spec(b1p.shape),
                const_spec(w2p.shape), const_spec(b2p.shape),
                const_spec(w3p.shape), const_spec(b3p.shape),
            ],
            out_specs=pl.BlockSpec((rows, pack * emb), lambda i: (i, 0)),
        ),
        compiler_params=pltpu.CompilerParams(
            dimension_semantics=("parallel",),   # batch axis: megacore-shardable
            vmem_limit_bytes=_VMEM_LIMIT,        # raise v5e's 16 MiB scoped default
        ),
        interpret=interpret,
    )(xp, w1p, b1p, w2p, b2p, w3p, b3p)

    return out.reshape(B_pad, emb)[:B]


# ---------------------------------------------------------------------------
# Parameter init (PyTorch nn.Linear default: U(-1/sqrt(fan_in), 1/sqrt(fan_in))).
# ---------------------------------------------------------------------------
def init_actor_params(key, embedding_dim, hidden_dim, dtype=jnp.float32):
    dims = [(3 * embedding_dim, hidden_dim),
            (hidden_dim, hidden_dim),
            (hidden_dim, embedding_dim)]
    params = []
    for (fan_in, fan_out) in dims:
        key, kw, kb = jax.random.split(key, 3)
        bound = 1.0 / math.sqrt(fan_in)
        w = jax.random.uniform(kw, (fan_in, fan_out), dtype, -bound, bound)
        b = jax.random.uniform(kb, (1, fan_out), dtype, -bound, bound)
        params.extend([w, b])
    return tuple(params)


def actor_forward_ref(x, params):
    """Pure-JAX reference for correctness checking."""
    w1, b1, w2, b2, w3, b3 = params
    h1 = jnp.maximum(x @ w1 + b1, 0.0)
    h2 = jnp.maximum(h1 @ w2 + b2, 0.0)
    return jnp.tanh(h2 @ w3 + b3)


if __name__ == "__main__":
    embedding_dim = 32
    hidden_dim = 64
    batch = 8  # tiny demo shape; realistic batches get multi-step pipelined grids

    key = jax.random.PRNGKey(0)
    key, kx, kb = jax.random.split(key, 3)
    params = init_actor_params(key, embedding_dim, hidden_dim)
    x = jax.random.normal(kx, (batch, 3 * embedding_dim), jnp.float32)

    # Prepare (pack) the weights ONCE; reuse across all forward calls.
    prepared_f32 = prepare_actor_params(params)

    # f32 path (matches the PyTorch module's numerics).
    out = jax.block_until_ready(actor_forward(x, prepared_f32))
    ref = actor_forward_ref(x, params)
    assert out.shape == (batch, embedding_dim), out.shape
    assert jnp.allclose(out, ref, atol=1e-5, rtol=1e-5), "f32 mismatch vs reference"

    # bf16 streaming path (halves x/W HBM traffic on v6e/v7x; still a DMA win
    # on v5e): only the MXU operands are bf16, accumulation/ReLU/tanh stay f32.
    params_bf16 = tuple(
        p.astype(jnp.bfloat16) if i % 2 == 0 else p for i, p in enumerate(params)
    )
    prepared_bf16 = prepare_actor_params(params_bf16, compute_dtype=jnp.bfloat16)
    out_bf16 = jax.block_until_ready(
        actor_forward(x.astype(jnp.bfloat16), prepared_bf16)
    )
    assert jnp.allclose(out_bf16.astype(jnp.float32), ref, atol=3e-2), "bf16 mismatch"

    # Larger, non-tile-multiple batch exercises padding + the >=4-step
    # pipelined "parallel" grid (>=2 steps per v7x TensorCore).
    xb = jax.random.normal(kb, (1000, 3 * embedding_dim), jnp.float32)
    out_b = jax.block_until_ready(actor_forward(xb, prepared_f32))
    ref_b = actor_forward_ref(xb, params)
    assert jnp.allclose(out_b, ref_b, atol=1e-5, rtol=1e-5), "batched mismatch"

    print("KERNEL_OK")
</pallas_src>

<mosaic_0001>
module attributes {stable_mosaic.version = 11 : i64} {
  func.func @actor_mlp_kernel(%arg0: i32, %arg1: memref<8x384xf32, #tpu.memory_space<vmem>>, %arg2: memref<384x256xf32, #tpu.memory_space<vmem>>, %arg3: memref<1x256xf32, #tpu.memory_space<vmem>>, %arg4: memref<256x256xf32, #tpu.memory_space<vmem>>, %arg5: memref<1x256xf32, #tpu.memory_space<vmem>>, %arg6: memref<256x128xf32, #tpu.memory_space<vmem>>, %arg7: memref<1x128xf32, #tpu.memory_space<vmem>>, %arg8: memref<8x128xf32, #tpu.memory_space<vmem>>) attributes {dimension_semantics = [#tpu.dimension_semantics<parallel>], iteration_bounds = array<i64: 1>, scalar_prefetch = 0 : i64, scratch_operands = 0 : i64, tpu.core_type = #tpu.core_type<tc>, window_params = [{transform_indices = @transform_0, window_bounds = array<i64: 8, 384>}, {pipeline_mode = #tpu.pipeline_mode<synchronous>, transform_indices = @transform_1, window_bounds = array<i64: 384, 256>}, {pipeline_mode = #tpu.pipeline_mode<synchronous>, transform_indices = @transform_2, window_bounds = array<i64: 1, 256>}, {pipeline_mode = #tpu.pipeline_mode<synchronous>, transform_indices = @transform_3, window_bounds = array<i64: 256, 256>}, {pipeline_mode = #tpu.pipeline_mode<synchronous>, transform_indices = @transform_4, window_bounds = array<i64: 1, 256>}, {pipeline_mode = #tpu.pipeline_mode<synchronous>, transform_indices = @transform_5, window_bounds = array<i64: 256, 128>}, {pipeline_mode = #tpu.pipeline_mode<synchronous>, transform_indices = @transform_6, window_bounds = array<i64: 1, 128>}, {transform_indices = @transform_7, window_bounds = array<i64: 8, 128>}]} {
    %c0 = arith.constant 0 : index
    %c0_0 = arith.constant 0 : index
    %0 = vector.load %arg1[%c0, %c0_0] : memref<8x384xf32, #tpu.memory_space<vmem>>, vector<8x384xf32>
    %c0_1 = arith.constant 0 : index
    %c0_2 = arith.constant 0 : index
    %1 = vector.load %arg2[%c0_1, %c0_2] : memref<384x256xf32, #tpu.memory_space<vmem>>, vector<384x256xf32>
    %cst = arith.constant dense<0.000000e+00> : vector<8x256xf32>
    %2 = tpu.matmul %0, %1, %cst {dimension_numbers = #tpu.dot_dimension_numbers<[1], [0], [0], [1], [0, 0, 1, 1], [], []>} : vector<8x384xf32>, vector<384x256xf32>, vector<8x256xf32> -> vector<8x256xf32>
    %c0_3 = arith.constant 0 : index
    %c0_4 = arith.constant 0 : index
    %3 = vector.load %arg3[%c0_3, %c0_4] : memref<1x256xf32, #tpu.memory_space<vmem>>, vector<1x256xf32>
    %4 = vector.broadcast %3 : vector<1x256xf32> to vector<8x256xf32>
    %5 = arith.addf %2, %4 : vector<8x256xf32>
    %cst_5 = arith.constant 0.000000e+00 : f32
    %6 = vector.broadcast %cst_5 : f32 to vector<8x256xf32>
    %7 = arith.maximumf %5, %6 : vector<8x256xf32>
    %c0_6 = arith.constant 0 : index
    %c0_7 = arith.constant 0 : index
    %8 = vector.load %arg4[%c0_6, %c0_7] : memref<256x256xf32, #tpu.memory_space<vmem>>, vector<256x256xf32>
    %cst_8 = arith.constant dense<0.000000e+00> : vector<8x256xf32>
    %9 = tpu.matmul %7, %8, %cst_8 {dimension_numbers = #tpu.dot_dimension_numbers<[1], [0], [0], [1], [0, 0, 1, 1], [], []>} : vector<8x256xf32>, vector<256x256xf32>, vector<8x256xf32> -> vector<8x256xf32>
    %c0_9 = arith.constant 0 : index
    %c0_10 = arith.constant 0 : index
    %10 = vector.load %arg5[%c0_9, %c0_10] : memref<1x256xf32, #tpu.memory_space<vmem>>, vector<1x256xf32>
    %11 = vector.broadcast %10 : vector<1x256xf32> to vector<8x256xf32>
    %12 = arith.addf %9, %11 : vector<8x256xf32>
    %cst_11 = arith.constant 0.000000e+00 : f32
    %13 = vector.broadcast %cst_11 : f32 to vector<8x256xf32>
    %14 = arith.maximumf %12, %13 : vector<8x256xf32>
    %c0_12 = arith.constant 0 : index
    %c0_13 = arith.constant 0 : index
    %15 = vector.load %arg6[%c0_12, %c0_13] : memref<256x128xf32, #tpu.memory_space<vmem>>, vector<256x128xf32>
    %cst_14 = arith.constant dense<0.000000e+00> : vector<8x128xf32>
    %16 = tpu.matmul %14, %15, %cst_14 {dimension_numbers = #tpu.dot_dimension_numbers<[1], [0], [0], [1], [0, 0, 1, 1], [], []>} : vector<8x256xf32>, vector<256x128xf32>, vector<8x128xf32> -> vector<8x128xf32>
    %c0_15 = arith.constant 0 : index
    %c0_16 = arith.constant 0 : index
    %17 = vector.load %arg7[%c0_15, %c0_16] : memref<1x128xf32, #tpu.memory_space<vmem>>, vector<1x128xf32>
    %18 = vector.broadcast %17 : vector<1x128xf32> to vector<8x128xf32>
    %19 = arith.addf %16, %18 : vector<8x128xf32>
    %20 = math.tanh %19 : vector<8x128xf32>
    %c0_17 = arith.constant 0 : index
    %c0_18 = arith.constant 0 : index
    %21 = vector.load %arg8[%c0_17, %c0_18] : memref<8x128xf32, #tpu.memory_space<vmem>>, vector<8x128xf32>
    tpu.vector_store %arg8[%c0_17, %c0_18], %20 {strides = array<i32>} : memref<8x128xf32, #tpu.memory_space<vmem>>, vector<8x128xf32>,
    return
  }
  func.func @transform_0(%arg0: i32) -> (i32, i32) {
    %c0_i32 = arith.constant 0 : i32
    %c0_i32_0 = arith.constant 0 : i32
    return %arg0, %c0_i32 : i32, i32
  }
  func.func @transform_1(%arg0: i32) -> (i32, i32) {
    %c0_i32 = arith.constant 0 : i32
    %c0_i32_0 = arith.constant 0 : i32
    %c0_i32_1 = arith.constant 0 : i32
    return %c0_i32, %c0_i32_0 : i32, i32
  }
  func.func @transform_2(%arg0: i32) -> (i32, i32) {
    %c0_i32 = arith.constant 0 : i32
    %c0_i32_0 = arith.constant 0 : i32
    %c0_i32_1 = arith.constant 0 : i32
    return %c0_i32, %c0_i32_0 : i32, i32
  }
  func.func @transform_3(%arg0: i32) -> (i32, i32) {
    %c0_i32 = arith.constant 0 : i32
    %c0_i32_0 = arith.constant 0 : i32
    %c0_i32_1 = arith.constant 0 : i32
    return %c0_i32, %c0_i32_0 : i32, i32
  }
  func.func @transform_4(%arg0: i32) -> (i32, i32) {
    %c0_i32 = arith.constant 0 : i32
    %c0_i32_0 = arith.constant 0 : i32
    %c0_i32_1 = arith.constant 0 : i32
    return %c0_i32, %c0_i32_0 : i32, i32
  }
  func.func @transform_5(%arg0: i32) -> (i32, i32) {
    %c0_i32 = arith.constant 0 : i32
    %c0_i32_0 = arith.constant 0 : i32
    %c0_i32_1 = arith.constant 0 : i32
    return %c0_i32, %c0_i32_0 : i32, i32
  }
  func.func @transform_6(%arg0: i32) -> (i32, i32) {
    %c0_i32 = arith.constant 0 : i32
    %c0_i32_0 = arith.constant 0 : i32
    %c0_i32_1 = arith.constant 0 : i32
    return %c0_i32, %c0_i32_0 : i32, i32
  }
  func.func @transform_7(%arg0: i32) -> (i32, i32) {
    %c0_i32 = arith.constant 0 : i32
    %c0_i32_0 = arith.constant 0 : i32
    return %arg0, %c0_i32 : i32, i32
  }
}

</mosaic_0001>

<bundles_post_ra>
// kernel: tpu_custom_call.1
= control target key start
LH: loop header
LB: loop body
LE: loop exit
PB: predicated region body
PF: predicated region fallthrough
CT: control target
= control target key end

     0   :  { %12 = vsyncpa [#allocation3], 0  ;;  %s1111_s0 = inlined_call_operand.hbm [shape: f32[8,384], index: 0, kind: input, shape index: {}]   ;;  %s1112_s1 = inlined_call_operand.hbm [shape: f32[384,256], index: 1, kind: input, shape index: {}]   ;;  %s1113_s2 = inlined_call_operand.vmem [shape: f32[1,256], index: 2, kind: input, shape index: {}]   ;;  %s1114_s3 = inlined_call_operand.hbm [shape: f32[256,256], index: 3, kind: input, shape index: {}]   ;;  %s1115_s4 = inlined_call_operand.vmem [shape: f32[1,256], index: 4, kind: input, shape index: {}]   ;;  %s1116_s5 = inlined_call_operand.hbm [shape: f32[256,128], index: 5, kind: input, shape index: {}]   ;;  %s1117_s6 = inlined_call_operand.vmem [shape: f32[1,128], index: 6, kind: input, shape index: {}]   ;;  %s1118_s7 = inlined_call_operand.hbm [shape: f32[8,128], index: 7, kind: output, shape index: {}]  }
   0x1   :  { %13 = vsyncpa [#allocation6], 0 }
   0x2   :  { %14 = vsyncpa [#allocation9], 0 }
   0x3   :  { %15 = vsyncpa [#allocation4], 0  ;;  %s974_s24 = smov [#allocation5]   ;;  %s856_s28 = scalar_lea.hbm %s1112_s1, 12288 }
   0x4   :  { %s31_s25 = sshll.u32 %s974_s24, 4  ;;  %p857_p0 = scmp.ne.s32.totalorder %s1112_s1, %s856_s28  ;;  %s32_s25 = int_to_ptr.vmem [resolvable:$true] %s31_s25 }
   0x5   :  { %p860_p1 = scmp.lt.u32.totalorder %s856_s28, %s1112_s1 }
   0x7   :  { %p862_p2 = pnand %p860_p1, %p857_p0 }
   0x9   :  { %865 = shalt.err (!%p862_p2)
}
   0xa   :  { %s866_s10 = scalar_lea.vmem %s32_s25, 12288  ;;  %p871_p4 = scmp.lt.s32.totalorder %s32_s25, %s32_s25 }
   0xb   :  { %p867_p3 = scmp.ne.s32.totalorder %s32_s25, %s866_s10  ;;  %p872_p5 = scmp.lt.s32.totalorder %s866_s10, %s866_s10 }
   0xd   :  { %p873_p6 = por %p872_p5, %p871_p4 }
   0xf   :  { %p874_p7 = pnand %p873_p6, %p867_p3 }
  0x11   :  { %877 = shalt.err (!%p874_p7)
}
  0x12   :  { %s975_s11 = smov 256   ;;  %s976_s12 = smov 16  }
  0x13   :  { %37 = dma.hbm_to_vmem [thread:$0]  %s1112_s1, 12288, %s32_s25, [#allocation6], %s975_s11, %s975_s11, %s976_s12  }
  0x14   :  { %s977_s15 = smov [#allocation2]   ;;  %s978_s17 = smov [#allocation7]  }
  0x15   :  { %s22_s16 = sshll.u32 %s977_s15, 4  ;;  %s45_s18 = sshll.u32 %s978_s17, 4  ;;  %s23_s16 = int_to_ptr.vmem [resolvable:$true] %s22_s16  ;;  %s46_s18 = int_to_ptr.vmem [resolvable:$true] %s45_s18 }
  0x16   :  { %s878_s21 = scalar_lea.hbm %s1111_s0, 384 }
  0x17   :  { %p879_p8 = scmp.ne.s32.totalorder %s1111_s0, %s878_s21  ;;  %p882_p9 = scmp.lt.u32.totalorder %s878_s21, %s1111_s0 }
  0x19   :  { %p884_p10 = pnand %p882_p9, %p879_p8 }
  0x1b   :  { %887 = shalt.err (!%p884_p10)
}
  0x1c   :  { %s888_s1 = scalar_lea.vmem %s23_s16, 384  ;;  %p893_p12 = scmp.lt.s32.totalorder %s23_s16, %s23_s16 }
  0x1d   :  { %p889_p11 = scmp.ne.s32.totalorder %s23_s16, %s888_s1  ;;  %p894_p13 = scmp.lt.s32.totalorder %s888_s1, %s888_s1 }
  0x1f   :  { %p895_p0 = por %p894_p13, %p893_p12 }
  0x21   :  { %p896_p1 = pnand %p895_p0, %p889_p11 }
  0x23   :  { %899 = shalt.err (!%p896_p1)
}
  0x24   :  { %25 = dma.hbm_to_vmem [thread:$0]  %s1111_s0, 384, %s23_s16, [#allocation3]  }
  0x25   :  { %s900_s30 = scalar_lea.hbm %s1114_s3, 8192 }
  0x26   :  { %p901_p2 = scmp.ne.s32.totalorder %s1114_s3, %s900_s30  ;;  %p904_p3 = scmp.lt.u32.totalorder %s900_s30, %s1114_s3 }
  0x28   :  { %p906_p4 = pnand %p904_p3, %p901_p2 }
  0x2a   :  { %909 = shalt.err (!%p906_p4)
}
  0x2b   :  { %s910_s14 = scalar_lea.vmem %s46_s18, 8192  ;;  %p915_p6 = scmp.lt.s32.totalorder %s46_s18, %s46_s18 }
  0x2c   :  { %p911_p5 = scmp.ne.s32.totalorder %s46_s18, %s910_s14  ;;  %p916_p7 = scmp.lt.s32.totalorder %s910_s14, %s910_s14 }
  0x2e   :  { %p917_p8 = por %p916_p7, %p915_p6 }
  0x30   :  { %p918_p9 = pnand %p917_p8, %p911_p5 }
  0x32   :  { %921 = shalt.err (!%p918_p9)
}
  0x33   :  { %51 = dma.hbm_to_vmem [thread:$0]  %s1114_s3, 8192, %s46_s18, [#allocation6], %s975_s11, %s975_s11, %s976_s12  }
  0x34   :  { %s979_s16 = smov [#allocation8]   ;;  %s922_s21 = scalar_lea.hbm %s1116_s5, 4096 }
  0x35   :  { %s59_s17 = sshll.u32 %s979_s16, 4  ;;  %p923_p10 = scmp.ne.s32.totalorder %s1116_s5, %s922_s21  ;;  %s60_s17 = int_to_ptr.vmem [resolvable:$true] %s59_s17 }
  0x36   :  { %p926_p11 = scmp.lt.u32.totalorder %s922_s21, %s1116_s5 }
  0x38   :  { %p928_p12 = pnand %p926_p11, %p923_p10 }
  0x3a   :  { %931 = shalt.err (!%p928_p12)
}
  0x3b   :  { %s932_s1 = scalar_lea.vmem %s60_s17, 4096  ;;  %p937_p0 = scmp.lt.s32.totalorder %s60_s17, %s60_s17 }
  0x3c   :  { %p933_p13 = scmp.ne.s32.totalorder %s60_s17, %s932_s1  ;;  %p938_p1 = scmp.lt.s32.totalorder %s932_s1, %s932_s1 }
  0x3e   :  { %p939_p2 = por %p938_p1, %p937_p0 }
  0x40   :  { %p940_p3 = pnand %p939_p2, %p933_p13 }
  0x42   :  { %943 = shalt.err (!%p940_p3)
}
  0x43   :  { %s980_s3 = smov 128   ;;  %s981_s11 = smov 8  }
  0x44   :  { %65 = dma.hbm_to_vmem [thread:$0]  %s1116_s5, 4096, %s60_s17, [#allocation9], %s980_s3, %s980_s3, %s981_s11  }
  0x45   :  { %966 = dma.done.wait [#allocation3], 384  }
  0x46   :  { %967 = vsyncadd [#allocation3], 4294966912 }
  0x47   :  { %968 = dma.done.wait [#allocation6], 20480  }
  0x48   :  { %969 = vsyncadd [#allocation6], 4294946816 }
  0x49   :  { %970 = dma.done.wait [#allocation9], 4096  }
  0x4a   :  { %971 = vsyncadd [#allocation9], 4294963200  ;;  %v84_v0 = vld [vmem:[#allocation5 + $0x8] sm:$0xff]  ;;  %v86_v1 = vld [vmem:[#allocation5 + $0x18] sm:$0xff] }
  0x4b   :  { %v83_v2 = vld [vmem:[#allocation5] sm:$0xff]  ;;  %v648_v3 = vpack.c.bf16 %v86_v1, %v84_v0  ;;  %v85_v4 = vld [vmem:[#allocation5 + $0x10] sm:$0xff]  ;;  %v88_v5 = vld [vmem:[#allocation5 + $0x28] sm:$0xff] }
  0x4c   :  { %v90_v6 = vld [vmem:[#allocation5 + $0x38] sm:$0xff]  ;;  %v650_v7 = vpack.c.bf16 %v85_v4, %v83_v2  ;;  %v87_v9 = vld [vmem:[#allocation5 + $0x20] sm:$0xff]  ;;  %v89_v10 = vld [vmem:[#allocation5 + $0x30] sm:$0xff] }
  0x4d   :  { %v652_v8 = vpack.c.bf16 %v90_v6, %v88_v5  ;;  %v92_v11 = vld [vmem:[#allocation5 + $0x48] sm:$0xff]  ;;  %649 = vmatprep.subr.bf16.mxu0 %v648_v3  ;;  %v94_v12 = vld [vmem:[#allocation5 + $0x58] sm:$0xff]  ;;  %v654_v13 = vpack.c.bf16 %v89_v10, %v87_v9  ;;  %v91_v15 = vld [vmem:[#allocation5 + $0x40] sm:$0xff] }
  0x4e   :  { %651 = vmatpush1.bf16.msra.mxu0 %v650_v7  ;;  %v656_v14 = vpack.c.bf16 %v94_v12, %v92_v11  ;;  %v93_v16 = vld [vmem:[#allocation5 + $0x50] sm:$0xff]  ;;  %v96_v17 = vld [vmem:[#allocation5 + $0x68] sm:$0xff]  ;;  %v98_v18 = vld [vmem:[#allocation5 + $0x78] sm:$0xff] }
  0x4f   :  { %653 = vmatprep.subr.bf16.mxu0 %v652_v8  ;;  %v658_v19 = vpack.c.bf16 %v93_v16, %v91_v15  ;;  %v660_v20 = vpack.c.bf16 %v98_v18, %v96_v17  ;;  %v95_v21 = vld [vmem:[#allocation5 + $0x60] sm:$0xff]  ;;  %v97_v22 = vld [vmem:[#allocation5 + $0x70] sm:$0xff]  ;;  %v100_v23 = vld [vmem:[#allocation5 + $0x88] sm:$0xff] }
  0x50   :  { %v102_v24 = vld [vmem:[#allocation5 + $0x98] sm:$0xff]  ;;  %v662_v25 = vpack.c.bf16 %v97_v22, %v95_v21  ;;  %v99_v27 = vld [vmem:[#allocation5 + $0x80] sm:$0xff]  ;;  %v101_v28 = vld [vmem:[#allocation5 + $0x90] sm:$0xff] }
  0x51   :  { %v664_v26 = vpack.c.bf16 %v102_v24, %v100_v23  ;;  %v104_v29 = vld [vmem:[#allocation5 + $0xa8] sm:$0xff]  ;;  %v106_v30 = vld [vmem:[#allocation5 + $0xb8] sm:$0xff]  ;;  %v666_v31 = vpack.c.bf16 %v101_v28, %v99_v27  ;;  %v103_v33 = vld [vmem:[#allocation5 + $0xa0] sm:$0xff] }
  0x52   :  { %655 = vmatpush1.bf16.msra.mxu0 %v654_v13  ;;  %v668_v32 = vpack.c.bf16 %v106_v30, %v104_v29  ;;  %v105_v34 = vld [vmem:[#allocation5 + $0xb0] sm:$0xff]  ;;  %v108_v35 = vld [vmem:[#allocation5 + $0xc8] sm:$0xff]  ;;  %v110_v36 = vld [vmem:[#allocation5 + $0xd8] sm:$0xff] }
  0x53   :  { %657 = vmatprep.subr.bf16.mxu0 %v656_v14  ;;  %v670_v37 = vpack.c.bf16 %v105_v34, %v103_v33  ;;  %v672_v38 = vpack.c.bf16 %v110_v36, %v108_v35  ;;  %v107_v39 = vld [vmem:[#allocation5 + $0xc0] sm:$0xff]  ;;  %v109_v40 = vld [vmem:[#allocation5 + $0xd0] sm:$0xff]  ;;  %v112_v42 = vld [vmem:[#allocation5 + $0xe8] sm:$0xff] }
  0x54   :  { %v81_v41 = vld [vmem:[#allocation2 + $0x8] sm:$0xff]  ;;  %v114_v43 = vld [vmem:[#allocation5 + $0xf8] sm:$0xff]  ;;  %v674_v44 = vpack.c.bf16 %v109_v40, %v107_v39  ;;  %v111_v46 = vld [vmem:[#allocation5 + $0xe0] sm:$0xff] }
  0x55   :  { %255 = vmatprep.mubr.f32.mxu0 %v81_v41  ;;  %v676_v45 = vpack.c.bf16 %v114_v43, %v112_v42  ;;  %v113_v47 = vld [vmem:[#allocation5 + $0xf0] sm:$0xff]  ;;  %v116_v48 = vld [vmem:[#allocation5 + $0x108] sm:$0xff]  ;;  %v118_v49 = vld [vmem:[#allocation5 + $0x118] sm:$0xff] }
  0x56   :  { %659 = vmatpush1.bf16.msra.mxu0 %v658_v19  ;;  %v678_v50 = vpack.c.bf16 %v113_v47, %v111_v46  ;;  %v680_v51 = vpack.c.bf16 %v118_v49, %v116_v48  ;;  %v115_v52 = vld [vmem:[#allocation5 + $0x100] sm:$0xff]  ;;  %v117_v53 = vld [vmem:[#allocation5 + $0x110] sm:$0xff]  ;;  %v120_v54 = vld [vmem:[#allocation5 + $0x128] sm:$0xff] }
  0x57   :  { %661 = vmatprep.subr.bf16.mxu0 %v660_v20  ;;  %v122_v55 = vld [vmem:[#allocation5 + $0x138] sm:$0xff]  ;;  %v119_v56 = vld [vmem:[#allocation5 + $0x120] sm:$0xff]  ;;  %v682_v57 = vpack.c.bf16 %v117_v53, %v115_v52  ;;  %v121_v58 = vld [vmem:[#allocation5 + $0x130] sm:$0xff] }
  0x58   :  { %v124_v59 = vld [vmem:[#allocation5 + $0x148] sm:$0xff]  ;;  %v126_v60 = vld [vmem:[#allocation5 + $0x158] sm:$0xff]  ;;  %v684_v61 = vpack.c.bf16 %v122_v55, %v120_v54  ;;  %v335_v0 = vld [vmem:[#allocation7] sm:$0xff]  ;;  %v686_v10 = vpack.c.bf16 %v121_v58, %v119_v56 }
  0x59   :  { %v336_v62 = vld [vmem:[#allocation7 + $0x8] sm:$0xff]  ;;  %v338_v63 = vld [vmem:[#allocation7 + $0x18] sm:$0xff]  ;;  %v337_v2 = vld [vmem:[#allocation7 + $0x10] sm:$0xff]  ;;  %v688_v12 = vpack.c.bf16 %v126_v60, %v124_v59 }
  0x5a   :  { %663 = vmatpush1.bf16.msra.mxu0 %v662_v25  ;;  %v744_v1 = vpack.c.bf16 %v338_v63, %v336_v62  ;;  %v340_v3 = vld [vmem:[#allocation7 + $0x28] sm:$0xff]  ;;  %v342_v4 = vld [vmem:[#allocation7 + $0x38] sm:$0xff]  ;;  %v746_v5 = vpack.c.bf16 %v337_v2, %v335_v0  ;;  %v339_v7 = vld [vmem:[#allocation7 + $0x20] sm:$0xff] }
  0x5b   :  { %665 = vmatprep.subr.bf16.mxu0 %v664_v26  ;;  %v748_v6 = vpack.c.bf16 %v342_v4, %v340_v3  ;;  %v341_v8 = vld [vmem:[#allocation7 + $0x30] sm:$0xff]  ;;  %v344_v9 = vld [vmem:[#allocation7 + $0x48] sm:$0xff]  ;;  %v346_v11 = vld [vmem:[#allocation7 + $0x58] sm:$0xff] }
  0x5c   :  { %745 = vmatprep.subr.bf16.mxu1 %v744_v1  ;;  %v123_v13 = vld [vmem:[#allocation5 + $0x140] sm:$0xff]  ;;  %v125_v14 = vld [vmem:[#allocation5 + $0x150] sm:$0xff]  ;;  %v128_v15 = vld [vmem:[#allocation5 + $0x168] sm:$0xff]  ;;  %v750_v16 = vpack.c.bf16 %v341_v8, %v339_v7  ;;  %v752_v18 = vpack.c.bf16 %v346_v11, %v344_v9 }
  0x5d   :  { %747 = vmatpush1.bf16.msra.mxu1 %v746_v5  ;;  %v130_v17 = vld [vmem:[#allocation5 + $0x178] sm:$0xff]  ;;  %v343_v19 = vld [vmem:[#allocation7 + $0x40] sm:$0xff]  ;;  %v345_v20 = vld [vmem:[#allocation7 + $0x50] sm:$0xff]  ;;  %v690_v23 = vpack.c.bf16 %v125_v14, %v123_v13 }
  0x5e   :  { %667 = vmatpush1.bf16.msra.mxu0 %v666_v31  ;;  %749 = vmatprep.subr.bf16.mxu1 %v748_v6  ;;  %v348_v21 = vld [vmem:[#allocation7 + $0x68] sm:$0xff]  ;;  %v350_v22 = vld [vmem:[#allocation7 + $0x78] sm:$0xff]  ;;  %v692_v24 = vpack.c.bf16 %v130_v17, %v128_v15  ;;  %v127_v25 = vld [vmem:[#allocation5 + $0x160] sm:$0xff]  ;;  %v754_v28 = vpack.c.bf16 %v345_v20, %v343_v19 }
  0x5f   :  { %669 = vmatprep.subr.bf16.mxu0 %v668_v32  ;;  %v129_v26 = vld [vmem:[#allocation5 + $0x170] sm:$0xff]  ;;  %v132_v27 = vld [vmem:[#allocation5 + $0x188] sm:$0xff]  ;;  %v134_v29 = vld [vmem:[#allocation5 + $0x198] sm:$0xff]  ;;  %v756_v30 = vpack.c.bf16 %v350_v22, %v348_v21 }
  0x60   :  { %v347_v31 = vld [vmem:[#allocation7 + $0x60] sm:$0xff]  ;;  %v349_v32 = vld [vmem:[#allocation7 + $0x70] sm:$0xff]  ;;  %v352_v33 = vld [vmem:[#allocation7 + $0x88] sm:$0xff]  ;;  %v694_v35 = vpack.c.bf16 %v129_v26, %v127_v25  ;;  %v696_v36 = vpack.c.bf16 %v134_v29, %v132_v27 }
  0x61   :  { %751 = vmatpush1.bf16.msra.mxu1 %v750_v16  ;;  %v354_v34 = vld [vmem:[#allocation7 + $0x98] sm:$0xff]  ;;  %v136_v39 = vld [vmem:[#allocation5 + $0x1a8] sm:$0xff]  ;;  %v758_v40 = vpack.c.bf16 %v349_v32, %v347_v31  ;;  %v351_v43 = vld [vmem:[#allocation7 + $0x80] sm:$0xff] }
  0x62   :  { %671 = vmatpush1.bf16.msra.mxu0 %v670_v37  ;;  %753 = vmatprep.subr.bf16.mxu1 %v752_v18  ;;  %v131_v37 = vld [vmem:[#allocation5 + $0x180] sm:$0xff]  ;;  %v138_v41 = vld [vmem:[#allocation5 + $0x1b8] sm:$0xff]  ;;  %v760_v42 = vpack.c.bf16 %v354_v34, %v352_v33  ;;  %v357_v56 = vld [vmem:[#allocation7 + $0xb0] sm:$0xff] }
  0x63   :  { %673 = vmatprep.subr.bf16.mxu0 %v672_v38  ;;  %v133_v38 = vld [vmem:[#allocation5 + $0x190] sm:$0xff]  ;;  %v358_v46 = vld [vmem:[#allocation7 + $0xb8] sm:$0xff]  ;;  %v700_v48 = vpack.c.bf16 %v138_v41, %v136_v39  ;;  %v135_v49 = vld [vmem:[#allocation5 + $0x1a0] sm:$0xff] }
  0x64   :  { %v698_v47 = vpack.c.bf16 %v133_v38, %v131_v37  ;;  %v142_v53 = vld [vmem:[#allocation5 + $0x1d8] sm:$0xff]  ;;  %v355_v55 = vld [vmem:[#allocation7 + $0xa0] sm:$0xff]  ;;  %v141_v62 = vld [vmem:[#allocation5 + $0x1d0] sm:$0xff] }
  0x65   :  { %755 = vmatpush1.bf16.msra.mxu1 %v754_v28  ;;  %v362_v58 = vld [vmem:[#allocation7 + $0xd8] sm:$0xff]  ;;  %v144_v63 = vld [vmem:[#allocation5 + $0x1e8] sm:$0xff]  ;;  %v766_v0 = vpack.c.bf16 %v357_v56, %v355_v55  ;;  %v359_v3 = vld [vmem:[#allocation7 + $0xc0] sm:$0xff] }
  0x66   :  { %675 = vmatpush1.bf16.msra.mxu0 %v674_v44  ;;  %757 = vmatprep.subr.bf16.mxu1 %v756_v30  ;;  %v353_v44 = vld [vmem:[#allocation7 + $0x90] sm:$0xff]  ;;  %v146_v1 = vld [vmem:[#allocation5 + $0x1f8] sm:$0xff]  ;;  %v364_v5 = vld [vmem:[#allocation7 + $0xe8] sm:$0xff] }
  0x67   :  { %677 = vmatprep.subr.bf16.mxu0 %v676_v45  ;;  %v356_v45 = vld [vmem:[#allocation7 + $0xa8] sm:$0xff]  ;;  %v762_v52 = vpack.c.bf16 %v353_v44, %v351_v43  ;;  %v361_v4 = vld [vmem:[#allocation7 + $0xd0] sm:$0xff]  ;;  %v366_v6 = vld [vmem:[#allocation7 + $0xf8] sm:$0xff]  ;;  %v708_v8 = vpack.c.bf16 %v146_v1, %v144_v63 }
  0x68   :  { %v764_v54 = vpack.c.bf16 %v358_v46, %v356_v45  ;;  %v143_v9 = vld [vmem:[#allocation5 + $0x1e0] sm:$0xff]  ;;  %v148_v11 = vld [vmem:[#allocation5 + $0x208] sm:$0xff]  ;;  %v150_v13 = vld [vmem:[#allocation5 + $0x218] sm:$0xff]  ;;  %v772_v14 = vpack.c.bf16 %v366_v6, %v364_v5  ;;  %v982_v45 = vmov 0.0  }
  0x69   :  { %759 = vmatpush1.bf16.msra.mxu1 %v758_v40  ;;  %v363_v15 = vld [vmem:[#allocation7 + $0xe0] sm:$0xff]  ;;  %v365_v16 = vld [vmem:[#allocation7 + $0xf0] sm:$0xff]  ;;  %v368_v17 = vld [vmem:[#allocation7 + $0x108] sm:$0xff]  ;;  %v712_v20 = vpack.c.bf16 %v150_v13, %v148_v11 }
  0x6a   :  { %679 = vmatpush1.bf16.msra.mxu0 %v678_v50  ;;  %v137_v50 = vld [vmem:[#allocation5 + $0x1b0] sm:$0xff]  ;;  %761 = vmatprep.subr.bf16.mxu1 %v760_v42  ;;  %v370_v18 = vld [vmem:[#allocation7 + $0x118] sm:$0xff]  ;;  %v147_v21 = vld [vmem:[#allocation5 + $0x200] sm:$0xff] }
  0x6b   :  { %681 = vmatprep.subr.bf16.mxu0 %v680_v51  ;;  %v140_v51 = vld [vmem:[#allocation5 + $0x1c8] sm:$0xff]  ;;  %v702_v59 = vpack.c.bf16 %v137_v50, %v135_v49  ;;  %v149_v22 = vld [vmem:[#allocation5 + $0x210] sm:$0xff]  ;;  %v154_v25 = vld [vmem:[#allocation5 + $0x238] sm:$0xff]  ;;  %v776_v26 = vpack.c.bf16 %v370_v18, %v368_v17 }
  0x6c   :  { %v704_v60 = vpack.c.bf16 %v142_v53, %v140_v51  ;;  %v367_v27 = vld [vmem:[#allocation7 + $0x100] sm:$0xff]  ;;  %v369_v28 = vld [vmem:[#allocation7 + $0x110] sm:$0xff]  ;;  %v372_v29 = vld [vmem:[#allocation7 + $0x128] sm:$0xff]  ;;  %v714_v32 = vpack.c.bf16 %v149_v22, %v147_v21 }
  0x6d   :  { %763 = vmatpush1.bf16.msra.mxu1 %v762_v52  ;;  %v374_v30 = vld [vmem:[#allocation7 + $0x138] sm:$0xff]  ;;  %v80_v31 = vld [vmem:[#allocation2] sm:$0xff]  ;;  %v151_v34 = vld [vmem:[#allocation5 + $0x220] sm:$0xff]  ;;  %v778_v37 = vpack.c.bf16 %v369_v28, %v367_v27 }
  0x6e   :  { %683 = vmatpush1.bf16.msra.mxu0 %v682_v57  ;;  %v360_v57 = vld [vmem:[#allocation7 + $0xc8] sm:$0xff]  ;;  %765 = vmatprep.subr.bf16.mxu1 %v764_v54  ;;  %v158_v38 = vld [vmem:[#allocation5 + $0x258] sm:$0xff]  ;;  %v780_v39 = vpack.c.bf16 %v374_v30, %v372_v29  ;;  %v371_v40 = vld [vmem:[#allocation7 + $0x120] sm:$0xff] }
  0x6f   :  { %685 = vmatprep.subr.bf16.mxu0 %v684_v61  ;;  %v139_v61 = vld [vmem:[#allocation5 + $0x1c0] sm:$0xff]  ;;  %v768_v2 = vpack.c.bf16 %v362_v58, %v360_v57  ;;  %v373_v41 = vld [vmem:[#allocation7 + $0x130] sm:$0xff]  ;;  %v376_v42 = vld [vmem:[#allocation7 + $0x148] sm:$0xff] }
  0x70   :  { %v706_v7 = vpack.c.bf16 %v141_v62, %v139_v61  ;;  %v378_v43 = vld [vmem:[#allocation7 + $0x158] sm:$0xff]  ;;  %v160_v49 = vld [vmem:[#allocation5 + $0x268] sm:$0xff]  ;;  %v782_v50 = vpack.c.bf16 %v373_v41, %v371_v40  ;;  %v375_v53 = vld [vmem:[#allocation7 + $0x140] sm:$0xff] }
  0x71   :  { %767 = vmatpush1.bf16.msra.mxu1 %v766_v0  ;;  %v162_v51 = vld [vmem:[#allocation5 + $0x278] sm:$0xff]  ;;  %v784_v52 = vpack.c.bf16 %v378_v43, %v376_v42  ;;  %v377_v54 = vld [vmem:[#allocation7 + $0x150] sm:$0xff]  ;;  %v380_v55 = vld [vmem:[#allocation7 + $0x168] sm:$0xff] }
  0x72   :  { %687 = vmatpush1.bf16.msra.mxu0 %v686_v10  ;;  %v145_v10 = vld [vmem:[#allocation5 + $0x1f0] sm:$0xff]  ;;  %769 = vmatprep.subr.bf16.mxu1 %v768_v2  ;;  %v382_v56 = vld [vmem:[#allocation7 + $0x178] sm:$0xff]  ;;  %v724_v58 = vpack.c.bf16 %v162_v51, %v160_v49  ;;  %v164_v61 = vld [vmem:[#allocation5 + $0x288] sm:$0xff]  ;;  %v786_v62 = vpack.c.bf16 %v377_v54, %v375_v53 }
  0x73   :  { %689 = vmatprep.subr.bf16.mxu0 %v688_v12  ;;  %v770_v12 = vpack.c.bf16 %v361_v4, %v359_v3  ;;  %v710_v19 = vpack.c.bf16 %v145_v10, %v143_v9  ;;  %v166_v63 = vld [vmem:[#allocation5 + $0x298] sm:$0xff]  ;;  %v788_v0 = vpack.c.bf16 %v382_v56, %v380_v55  ;;  %v379_v1 = vld [vmem:[#allocation7 + $0x160] sm:$0xff]  ;;  %v381_v2 = vld [vmem:[#allocation7 + $0x170] sm:$0xff]  ;;  %v181_v55 = vlaneseq }
  0x74   :  { %v384_v3 = vld [vmem:[#allocation7 + $0x188] sm:$0xff]  ;;  %v386_v4 = vld [vmem:[#allocation7 + $0x198] sm:$0xff]  ;;  %v728_v6 = vpack.c.bf16 %v166_v63, %v164_v61  ;;  %v790_v10 = vpack.c.bf16 %v381_v2, %v379_v1  ;;  %v383_v13 = vld [vmem:[#allocation7 + $0x180] sm:$0xff] }
  0x75   :  { %771 = vmatpush1.bf16.msra.mxu1 %v770_v12  ;;  %v168_v9 = vld [vmem:[#allocation5 + $0x2a8] sm:$0xff]  ;;  %v170_v11 = vld [vmem:[#allocation5 + $0x2b8] sm:$0xff]  ;;  %v792_v12 = vpack.c.bf16 %v386_v4, %v384_v3  ;;  %v177_v40 = vld [vmem:[#allocation5 + $0x2f0] sm:$0xff]  ;;  %v1078_v56 = vshrl.u32 %v181_v55, 7 }
  0x76   :  { %691 = vmatpush1.bf16.msra.mxu0 %v690_v23  ;;  %v152_v23 = vld [vmem:[#allocation5 + $0x228] sm:$0xff]  ;;  %773 = vmatprep.subr.bf16.mxu1 %v772_v14  ;;  %v385_v14 = vld [vmem:[#allocation7 + $0x190] sm:$0xff]  ;;  %v732_v18 = vpack.c.bf16 %v170_v11, %v168_v9  ;;  %v394_v28 = vld [vmem:[#allocation7 + $0x1d8] sm:$0xff] }
  0x77   :  { %693 = vmatprep.subr.bf16.mxu0 %v692_v24  ;;  %v774_v24 = vpack.c.bf16 %v365_v16, %v363_v15  ;;  %v716_v33 = vpack.c.bf16 %v154_v25, %v152_v23  ;;  %v388_v15 = vld [vmem:[#allocation7 + $0x1a8] sm:$0xff]  ;;  %v390_v16 = vld [vmem:[#allocation7 + $0x1b8] sm:$0xff]  ;;  %v794_v22 = vpack.c.bf16 %v385_v14, %v383_v13  ;;  %v387_v25 = vld [vmem:[#allocation7 + $0x1a0] sm:$0xff] }
  0x78   :  { %v172_v21 = vld [vmem:[#allocation5 + $0x2c8] sm:$0xff]  ;;  %v174_v23 = vld [vmem:[#allocation5 + $0x2d8] sm:$0xff]  ;;  %v391_v43 = vld [vmem:[#allocation7 + $0x1c0] sm:$0xff] }
  0x79   :  { %775 = vmatpush1.bf16.msra.mxu1 %v774_v24  ;;  %v796_v24 = vpack.c.bf16 %v390_v16, %v388_v15  ;;  %v392_v27 = vld [vmem:[#allocation7 + $0x1c8] sm:$0xff]  ;;  %v736_v30 = vpack.c.bf16 %v174_v23, %v172_v21  ;;  %v82_v42 = vld [vmem:[#allocation2 + $0x10] sm:$0xff]  ;;  %v395_v49 = vld [vmem:[#allocation7 + $0x1e0] sm:$0xff] }
  0x7a   :  { %695 = vmatpush1.bf16.msra.mxu0 %v694_v35  ;;  %v153_v35 = vld [vmem:[#allocation5 + $0x230] sm:$0xff]  ;;  %777 = vmatprep.subr.bf16.mxu1 %v776_v26  ;;  %v501_v53 = vld [vmem:[#allocation8 + $0x88] sm:$0xff]  ;;  %v484_v1 = vld [vmem:[#allocation8] sm:$0xff] }
  0x7b   :  { %697 = vmatprep.subr.bf16.mxu0 %v696_v36  ;;  %v156_v36 = vld [vmem:[#allocation5 + $0x248] sm:$0xff]  ;;  %v718_v44 = vpack.c.bf16 %v153_v35, %v151_v34  ;;  %v389_v26 = vld [vmem:[#allocation7 + $0x1b0] sm:$0xff]  ;;  %v178_v35 = vld [vmem:[#allocation5 + $0x2f8] sm:$0xff] }
  0x7c   :  { %v720_v46 = vpack.c.bf16 %v158_v38, %v156_v36  ;;  %v176_v34 = vld [vmem:[#allocation5 + $0x2e8] sm:$0xff]  ;;  %v800_v36 = vpack.c.bf16 %v394_v28, %v392_v27  ;;  %v502_v4 = vld [vmem:[#allocation8 + $0x90] sm:$0xff]  ;;  %v487_v11 = vld [vmem:[#allocation8 + $0x18] sm:$0xff] }
  0x7d   :  { %779 = vmatpush1.bf16.msra.mxu1 %v778_v37  ;;  %v740_v38 = vpack.c.bf16 %v178_v35, %v176_v34  ;;  %v485_v2 = vld [vmem:[#allocation8 + $0x8] sm:$0xff]  ;;  %v488_v16 = vld [vmem:[#allocation8 + $0x20] sm:$0xff]  ;;  %v491_v23 = vld [vmem:[#allocation8 + $0x38] sm:$0xff] }
  0x7e   :  { %699 = vmatpush1.bf16.msra.mxu0 %v698_v47  ;;  %v155_v47 = vld [vmem:[#allocation5 + $0x240] sm:$0xff]  ;;  %781 = vmatprep.subr.bf16.mxu1 %v780_v39  ;;  %v505_v13 = vld [vmem:[#allocation8 + $0xa8] sm:$0xff]  ;;  %v494_v34 = vld [vmem:[#allocation8 + $0x50] sm:$0xff] }
  0x7f   :  { %701 = vmatprep.subr.bf16.mxu0 %v700_v48  ;;  %v157_v48 = vld [vmem:[#allocation5 + $0x250] sm:$0xff]  ;;  %v175_v39 = vld [vmem:[#allocation5 + $0x2e0] sm:$0xff]  ;;  %v495_v35 = vld [vmem:[#allocation8 + $0x58] sm:$0xff] }
  0x80   :  { %v722_v57 = vpack.c.bf16 %v157_v48, %v155_v47  ;;  %v742_v41 = vpack.c.bf16 %v177_v40, %v175_v39  ;;  %v398_v47 = vld [vmem:[#allocation7 + $0x1f8] sm:$0xff]  ;;  %v492_v28 = vld [vmem:[#allocation8 + $0x40] sm:$0xff] }
  0x81   :  { %783 = vmatpush1.bf16.msra.mxu1 %v782_v50  ;;  %v397_v50 = vld [vmem:[#allocation7 + $0x1f0] sm:$0xff]  ;;  %v496_v40 = vld [vmem:[#allocation8 + $0x60] sm:$0xff] }
  0x82   :  { %703 = vmatpush1.bf16.msra.mxu0 %v702_v59  ;;  %v159_v59 = vld [vmem:[#allocation5 + $0x260] sm:$0xff]  ;;  %785 = vmatprep.subr.bf16.mxu1 %v784_v52  ;;  %v806_v51 = vpack.c.bf16 %v397_v50, %v395_v49  ;;  %v399_v49 = vld [vmem:[%s1115_s4] sm:$0x3]  ;;  %s983_s4 = smov [#allocation10]  }
  0x83   :  { %705 = vmatprep.subr.bf16.mxu0 %v704_v60  ;;  %v161_v60 = vld [vmem:[#allocation5 + $0x270] sm:$0xff]  ;;  %v500_v52 = vld [vmem:[#allocation8 + $0x80] sm:$0xff]  ;;  %s601_s30 = sshll.u32 %s983_s4, 4  ;;  %s602_s30 = int_to_ptr.vmem [resolvable:$true] %s601_s30 }
  0x84   :  { %v726_v5 = vpack.c.bf16 %v161_v60, %v159_v59  ;;  %v808_v54 = vpack.c.bf16 %v501_v53, %v500_v52  ;;  %v187_v59 = vsub.s32 1, %v1078_v56  ;;  %s944_s8 = scalar_lea.vmem %s602_s30, 128  ;;  %p949_p5 = scmp.lt.s32.totalorder %s602_s30, %s602_s30 }
  0x85   :  { %787 = vmatpush1.bf16.msra.mxu1 %v786_v62  ;;  %p945_p4 = scmp.ne.s32.totalorder %s602_s30, %s944_s8  ;;  %p950_p6 = scmp.lt.s32.totalorder %s944_s8, %s944_s8 }
  0x86   :  { %707 = vmatpush1.bf16.msra.mxu0 %v706_v7  ;;  %v163_v7 = vld [vmem:[#allocation5 + $0x280] sm:$0xff]  ;;  %789 = vmatprep.subr.bf16.mxu1 %v788_v0 }
  0x87   :  { %709 = vmatprep.subr.bf16.mxu0 %v708_v8  ;;  %v165_v8 = vld [vmem:[#allocation5 + $0x290] sm:$0xff]  ;;  %p951_p7 = por %p950_p6, %p949_p5 }
  0x88   :  { %v730_v17 = vpack.c.bf16 %v165_v8, %v163_v7  ;;  %v810_v7 = vpack.c.bf16 %v485_v2, %v484_v1 }
  0x89   :  { %791 = vmatpush1.bf16.msra.mxu1 %v790_v10  ;;  %v486_v10 = vld [vmem:[#allocation8 + $0x10] sm:$0xff]  ;;  %p952_p8 = pnand %p951_p7, %p945_p4 }
  0x8a   :  { %711 = vmatpush1.bf16.msra.mxu0 %v710_v19  ;;  %v167_v19 = vld [vmem:[#allocation5 + $0x2a0] sm:$0xff]  ;;  %793 = vmatprep.subr.bf16.mxu1 %v792_v12  ;;  %v814_v14 = vpack.c.bf16 %v487_v11, %v486_v10 }
  0x8b   :  { %713 = vmatprep.subr.bf16.mxu0 %v712_v20  ;;  %v169_v20 = vld [vmem:[#allocation5 + $0x2b0] sm:$0xff]  ;;  %v504_v12 = vld [vmem:[#allocation8 + $0xa0] sm:$0xff] }
  0x8c   :  { %v734_v29 = vpack.c.bf16 %v169_v20, %v167_v19  ;;  %v816_v15 = vpack.c.bf16 %v505_v13, %v504_v12  ;;  %v507_v19 = vld [vmem:[#allocation8 + $0xb8] sm:$0xff] }
  0x8d   :  { %256 = vmatmul.mubr.f32.vlgmr.msra.gmra.mrb[0].mxu0 %v80_v31  ;;  %v171_v31 = vld [vmem:[#allocation5 + $0x2c0] sm:$0xff]  ;;  %795 = vmatpush1.bf16.msra.mxu1 %v794_v22  ;;  %v490_v22 = vld [vmem:[#allocation8 + $0x30] sm:$0xff] }
  0x8e   :  { %715 = vmatpush1.bf16.msra.mxu0 %v714_v32  ;;  %326 = vmatprep.mubr.f32.mxu0 %v982_v45  ;;  %v173_v32 = vld [vmem:[#allocation5 + $0x2d0] sm:$0xff] }
  0x8f   :  { %717 = vmatprep.subr.bf16.mxu0 %v716_v33  ;;  %v798_v33 = vpack.c.bf16 %v389_v26, %v387_v25  ;;  %797 = vmatprep.subr.bf16.mxu1 %v796_v24  ;;  %v738_v37 = vpack.c.bf16 %v173_v32, %v171_v31  ;;  %v508_v24 = vld [vmem:[#allocation8 + $0xc0] sm:$0xff]  ;;  %v509_v25 = vld [vmem:[#allocation8 + $0xc8] sm:$0xff]  ;;  %v822_v26 = vpack.c.bf16 %v491_v23, %v490_v22  ;;  %v511_v31 = vld [vmem:[#allocation8 + $0xd8] sm:$0xff] }
  0x90   :  { %v824_v27 = vpack.c.bf16 %v509_v25, %v508_v24 }
  0x91   :  { %799 = vmatpush1.bf16.msra.mxu1 %v798_v33 }
  0x92   :  { %719 = vmatpush1.bf16.msra.mxu0 %v718_v44  ;;  %801 = vmatprep.subr.bf16.mxu1 %v800_v36  ;;  %v393_v44 = vld [vmem:[#allocation7 + $0x1d0] sm:$0xff]  ;;  %v512_v36 = vld [vmem:[#allocation8 + $0xe0] sm:$0xff] }
  0x93   :  { %721 = vmatprep.subr.bf16.mxu0 %v720_v46  ;;  %v802_v45 = vpack.c.bf16 %v393_v44, %v391_v43  ;;  %v396_v46 = vld [vmem:[#allocation7 + $0x1e8] sm:$0xff]  ;;  %v514_v43 = vld [vmem:[#allocation8 + $0xf0] sm:$0xff]  ;;  %v515_v44 = vld [vmem:[#allocation8 + $0xf8] sm:$0xff] }
  0x94   :  { %v804_v48 = vpack.c.bf16 %v398_v47, %v396_v46  ;;  %v498_v46 = vld [vmem:[#allocation8 + $0x70] sm:$0xff]  ;;  %v499_v47 = vld [vmem:[#allocation8 + $0x78] sm:$0xff] }
  0x95   :  { %803 = vmatpush1.bf16.msra.mxu1 %v802_v45  ;;  %v836_v45 = vpack.c.bf16 %v515_v44, %v514_v43 }
  0x96   :  { %723 = vmatpush1.bf16.msra.mxu0 %v722_v57  ;;  %805 = vmatprep.subr.bf16.mxu1 %v804_v48  ;;  %v183_v57 = vsub.s32 0, %v1078_v56  ;;  %v838_v48 = vpack.c.bf16 %v499_v47, %v498_v46 }
  0x97   :  { %725 = vmatprep.subr.bf16.mxu0 %v724_v58  ;;  %v179_v58 = vld [vmem:[%s1113_s2] sm:$0x3] }
  0x98   :  { %v184_v60 = vrot.slane %v179_v58, %v183_v57  ;;  %v188_v61 = vrot.slane %v179_v58, %v187_v59  ;;  %v404_v50 = vrot.slane %v399_v49, %v183_v57 }
  0x99   :  { %807 = vmatpush1.bf16.msra.mxu1 %v806_v51  ;;  %v408_v51 = vrot.slane %v399_v49, %v187_v59 }
  0x9a   :  { %727 = vmatpush1.bf16.msra.mxu0 %v726_v5  ;;  %809 = vmatprep.subr.bf16.mxu1 %v808_v54  ;;  %v503_v5 = vld [vmem:[#allocation8 + $0x98] sm:$0xff] }
  0x9b   :  { %729 = vmatprep.subr.bf16.mxu0 %v728_v6  ;;  %v812_v9 = vpack.c.bf16 %v503_v5, %v502_v4 }
  0x9e   :  { %731 = vmatpush1.bf16.msra.mxu0 %v730_v17  ;;  %v489_v17 = vld [vmem:[#allocation8 + $0x28] sm:$0xff] }
  0x9f   :  { %733 = vmatprep.subr.bf16.mxu0 %v732_v18  ;;  %v506_v18 = vld [vmem:[#allocation8 + $0xb0] sm:$0xff]  ;;  %v818_v20 = vpack.c.bf16 %v489_v17, %v488_v16 }
  0xa0   :  { %v820_v21 = vpack.c.bf16 %v507_v19, %v506_v18 }
  0xa2   :  { %735 = vmatpush1.bf16.msra.mxu0 %v734_v29  ;;  %v493_v29 = vld [vmem:[#allocation8 + $0x48] sm:$0xff] }
  0xa3   :  { %737 = vmatprep.subr.bf16.mxu0 %v736_v30  ;;  %v510_v30 = vld [vmem:[#allocation8 + $0xd0] sm:$0xff]  ;;  %v826_v32 = vpack.c.bf16 %v493_v29, %v492_v28 }
  0xa4   :  { %v828_v33 = vpack.c.bf16 %v511_v31, %v510_v30 }
  0xa6   :  { %739 = vmatpush1.bf16.msra.mxu0 %v738_v37  ;;  %v513_v37 = vld [vmem:[#allocation8 + $0xe8] sm:$0xff] }
  0xa7   :  { %741 = vmatprep.subr.bf16.mxu0 %v740_v38  ;;  %v830_v38 = vpack.c.bf16 %v495_v35, %v494_v34  ;;  %v832_v39 = vpack.c.bf16 %v513_v37, %v512_v36 }
  0xaa   :  { %743 = vmatpush1.bf16.msra.mxu0 %v742_v41  ;;  %v497_v41 = vld [vmem:[#allocation8 + $0x68] sm:$0xff] }
  0xad   :  { %327 = vmatmul.mubr.f32.vlgmr.msra.gmra.mrb[0].mxu0 %v82_v42  ;;  %v834_v42 = vpack.c.bf16 %v497_v41, %v496_v40 }
 0x180   :  { %v328_v62 = vpop.f32.mrb[0].mxu0 }
 0x181   :  { %v840_v63 = vadd.f32 %v328_v62, %v184_v60  ;;  %v330_v0 = vpop.f32.mrb[1].mxu0  ;;  %v612_v62 = vld [vmem:[%s1117_s6] ss:$0 sm:$0xff] }
 0x182   :  { %v841_v3 = vadd.f32 %v330_v0, %v188_v61 }
 0x183   :  { %v333_v8 = vmax.f32 %v840_v63, 0.0 }
 0x184   :  { %v334_v6 = vmax.f32 %v841_v3, 0.0 }
 0x186   :  { %475 = vmatprep.mubr.f32.mxu1 %v334_v6 }
 0x187   :  { %476 = vmatmul.mubr.f32.vlgmr.msra.gmra.mrb[0].mxu1 %v333_v8 }
 0x188   :  { %811 = vmatpush3.bf16.msra.mxu1 %v810_v7 }
 0x189   :  { %813 = vmatprep.subr.bf16.mxu1 %v812_v9 }
 0x18c   :  { %815 = vmatpush3.bf16.msra.mxu1 %v814_v14 }
 0x18d   :  { %817 = vmatprep.subr.bf16.mxu1 %v816_v15 }
 0x190   :  { %819 = vmatpush3.bf16.msra.mxu1 %v818_v20 }
 0x191   :  { %821 = vmatprep.subr.bf16.mxu1 %v820_v21 }
 0x194   :  { %823 = vmatpush3.bf16.msra.mxu1 %v822_v26 }
 0x195   :  { %825 = vmatprep.subr.bf16.mxu1 %v824_v27 }
 0x198   :  { %827 = vmatpush3.bf16.msra.mxu1 %v826_v32 }
 0x199   :  { %829 = vmatprep.subr.bf16.mxu1 %v828_v33 }
 0x19c   :  { %831 = vmatpush3.bf16.msra.mxu1 %v830_v38 }
 0x19d   :  { %833 = vmatprep.subr.bf16.mxu1 %v832_v39 }
 0x1a0   :  { %835 = vmatpush3.bf16.msra.mxu1 %v834_v42 }
 0x1a1   :  { %837 = vmatprep.subr.bf16.mxu1 %v836_v45 }
 0x1a4   :  { %839 = vmatpush3.bf16.msra.mxu1 %v838_v48 }
 0x25a   :  { %v477_v52 = vpop.f32.mrb[0].mxu1 }
 0x25b   :  { %v478_v53 = vadd.f32 %v477_v52, %v404_v50  ;;  %v479_v54 = vpop.f32.mrb[1].mxu1 }
 0x25c   :  { %v480_v55 = vadd.f32 %v479_v54, %v408_v51 }
 0x25d   :  { %v482_v60 = vmax.f32 %v478_v53, 0.0 }
 0x25e   :  { %v483_v58 = vmax.f32 %v480_v55, 0.0 }
 0x260   :  { %587 = vmatprep.mubr.f32.mxu1 %v483_v58 }
 0x261   :  { %588 = vmatmul.mubr.f32.vlgmr.msra.gmra.mrb[2].mxu1 %v482_v60 }
 0x334   :  { %v645_v61 = vpop.f32.mrb[2].mxu1 }
 0x335   :  { %v646_v63 = vpop.f32.mrb[3].mxu1 }
 0x336   :  { %v647_v0 = vadd.f32 %v646_v63, %v645_v61 }
 0x338   :  { %v590_v1 = vadd.f32 %v647_v0, %v612_v62 }
 0x33a   :  { %854 = vtanh.f32 %v590_v1 }
 0x344   :  { %v855_v56 = vpop.eup %854 }
 0x345   :  { %594 = vst [vmem:[#allocation10] sm:$0xff] %v855_v56 }
 0x346   :  { %955 = shalt.err (!%p952_p8)
}
 0x347   :  { %s956_s6 = scalar_lea.hbm %s1118_s7, 128 }
 0x348   :  { %p957_p9 = scmp.ne.s32.totalorder %s1118_s7, %s956_s6  ;;  %p960_p10 = scmp.lt.u32.totalorder %s956_s6, %s1118_s7 }
 0x34a   :  { %p962_p11 = pnand %p960_p10, %p957_p9 }
 0x34c   :  { %965 = shalt.err (!%p962_p11)
}
 0x34d   :  { %604 = dma.vmem_to_hbm [thread:$0]  %s602_s30, 128, %s1118_s7, [#allocation4]  }
 0x34e   :  { %972 = dma.done.wait [#allocation4], 128  }
 0x34f   :  { %973 = vsyncadd [#allocation4], 4294967168 }
 0x350   :  { %608 = vsyncpa [#allocation3], 1 }
 0x351   :  { %609 = vsyncpa [#allocation6], 1 }
 0x352   :  { %610 = vsyncpa [#allocation9], 1 }
 0x353   :  { %611 = vsyncpa [#allocation4], 1 }

</bundles_post_ra>
